<compile_context>
chip_gen: v5e
topology: v5e:2x2
jax: 0.10.0
libtpu: 0.0.40
codegen_flags: <defaults>
</compile_context>

<pallas_src>
import jax
import jax.numpy as jnp
from jax.experimental import pallas as pl
from jax.experimental.pallas import tpu as pltpu


def _round_up(x, m):
    return ((x + m - 1) // m) * m


def _pad2d(a, rows, cols):
    r, c = a.shape
    if r == rows and c == cols:
        return a
    return jnp.pad(a, ((0, rows - r), (0, cols - c)))


def _pick_tile(dim, align, target):
    """Pick a tile size (multiple of `align`, <= target) that minimizes the
    padded extent of `dim`; prefer the largest such tile.  Returns (tile, padded)."""
    aligned = _round_up(dim, align)
    target = max(align, min(target, aligned))
    best_t, best_pad = align, _round_up(aligned, align)
    t = align
    while t <= target:
        padded = _round_up(aligned, t)
        if padded < best_pad or (padded == best_pad and t > best_t):
            best_t, best_pad = t, padded
        t += align
    return best_t, best_pad


def _half_linear_kernel(x_ref, w_ref, b_ref, o_ref):
    # Grid = (M tiles, N tiles, K tiles); K is the reduction axis (last).
    # The output block is K-resident (its index_map ignores k), so it doubles
    # as the fp32 accumulator — no separate VMEM scratch.
    k = pl.program_id(2)

    @pl.when(k == 0)
    def _():
        o_ref[...] = jnp.zeros_like(o_ref)

    # X and W arrive as bf16 (autocast emulation done once in the wrapper);
    # MXU matmul with fp32 accumulation.
    o_ref[...] += jnp.dot(x_ref[...], w_ref[...],
                          preferred_element_type=jnp.float32)

    @pl.when(k == pl.num_programs(2) - 1)
    def _():
        y = o_ref[...] + b_ref[...].astype(jnp.float32)        # [tm, tn] fp32
        # Round to the autocast op's bf16 output, then the wrapper's .float().
        o_ref[...] = y.astype(jnp.bfloat16).astype(jnp.float32)


def _half_linear_padded(x_bf16_p, w_kn_bf16_p, b_bf16_p, tm, tn, tk):
    """x: [Mp, Kp] bf16, w: [Kp, Np] bf16, b: [1, Np] bf16 -> [Mp, Np] fp32."""
    Mp, Kp = x_bf16_p.shape
    Kp2, Np = w_kn_bf16_p.shape
    assert Kp == Kp2

    grid = (Mp // tm, Np // tn, Kp // tk)

    cost = pl.CostEstimate(
        flops=2 * Mp * Np * Kp,
        transcendentals=0,
        bytes_accessed=2 * Mp * Kp + 2 * Kp * Np + 2 * Np + 4 * Mp * Np,
    )

    # Per-step VMEM footprint (2-deep pipelining on every operand), with
    # headroom; capped at 48 MiB so the budget is safe on v7x's 64 MiB VMEM.
    vmem_need = 2 * (tm * tk * 2 + tk * tn * 2 + tn * 2) + 2 * (tm * tn * 4)
    vmem_limit = int(min(max(vmem_need + (4 << 20), 32 << 20), 48 << 20))

    return pl.pallas_call(
        _half_linear_kernel,
        out_shape=jax.ShapeDtypeStruct((Mp, Np), jnp.float32),
        grid_spec=pltpu.PrefetchScalarGridSpec(
            num_scalar_prefetch=0,
            grid=grid,
            in_specs=[
                pl.BlockSpec((tm, tk), lambda i, j, k: (i, k)),   # X tile (bf16)
                pl.BlockSpec((tk, tn), lambda i, j, k: (k, j)),   # W tile (bf16, [K,N])
                pl.BlockSpec((1, tn), lambda i, j, k: (0, j)),    # bias tile (bf16)
            ],
            out_specs=pl.BlockSpec((tm, tn), lambda i, j, k: (i, j)),
        ),
        compiler_params=pltpu.CompilerParams(
            # M/N parallel (megacore shards the output space), K reduction arbitrary.
            dimension_semantics=("parallel", "parallel", "arbitrary"),
            vmem_limit_bytes=vmem_limit,
        ),
        cost_estimate=cost,
    )(x_bf16_p, w_kn_bf16_p, b_bf16_p)


class HalfPrecisionLinear:
    """Pallas equivalent of HalfPrecisionModuleWrapper(nn.Linear).

    Weight/bias are cast to bf16 (and the weight transposed to [K, N]) once
    at construction, so the per-forward path pays no weight traffic beyond
    the kernel's own streaming.
    """

    def __init__(self, weight, bias=None, *, tm=1024, tn=1024, tk=1024):
        N, K = weight.shape
        if bias is None:
            bias = jnp.zeros((N,), dtype=weight.dtype)
        self.in_features = K
        self.out_features = N
        self._tm_target, self._tn_target, self._tk_target = tm, tn, tk

        # Tile/pad choices for the weight dims are input-independent: fix now.
        self._tn, self._Np = _pick_tile(N, 128, tn)
        self._tk, self._Kp = _pick_tile(K, 128, tk)

        w_kn_bf16 = jnp.transpose(weight.astype(jnp.bfloat16))   # [K, N] bf16
        self._w_p = _pad2d(w_kn_bf16, self._Kp, self._Np)
        self._b_p = _pad2d(bias.astype(jnp.bfloat16).reshape(1, N), 1, self._Np)

    def __call__(self, x):
        orig_shape = x.shape
        K = orig_shape[-1]
        assert K == self.in_features
        x2d = x.reshape(-1, K)
        M = x2d.shape[0]

        tm, Mp = _pick_tile(M, 8, self._tm_target)
        tn, tk = self._tn, self._tk

        # Make sure the parallel grid has >= 2 tiles so a second TensorCore
        # (megacore) is not left idle on medium problems.
        if (Mp // tm) * (self._Np // tn) == 1:
            if tm % 16 == 0:
                tm //= 2
            elif tn % 256 == 0:
                tn //= 2

        # Autocast emulation: X -> bf16, fused with the alignment pad.
        x_p = _pad2d(x2d.astype(jnp.bfloat16), Mp, self._Kp)

        out = _half_linear_padded(x_p, self._w_p, self._b_p, tm, tn, tk)
        y2d = out[:M, :self.out_features]
        return y2d.reshape(*orig_shape[:-1], self.out_features)


def half_precision_module_wrapper_forward(x, weight, bias):
    """One-shot convenience API (builds the wrapper, runs forward)."""
    return HalfPrecisionLinear(weight, bias)(x)


if __name__ == "__main__":
    key = jax.random.PRNGKey(0)
    k_x, k_w, k_b, k_x2, k_w2, k_b2 = jax.random.split(key, 6)

    def reference(x, weight, bias):
        # Pure-JAX emulation of torch.autocast(bf16) Linear + .float().
        K = x.shape[-1]
        N = weight.shape[0]
        y = (jnp.dot(x.astype(jnp.bfloat16).reshape(-1, K),
                     weight.astype(jnp.bfloat16).T,
                     preferred_element_type=jnp.float32)
             + bias.astype(jnp.bfloat16).astype(jnp.float32)
             ).astype(jnp.bfloat16).astype(jnp.float32)
        return y.reshape(*x.shape[:-1], N)

    # --- Test 1: small shapes matching the module's canonical usage. ---
    batch, seq, in_features, out_features = 2, 8, 32, 32
    x = jax.random.normal(k_x, (batch, seq, in_features), dtype=jnp.float32)
    weight = jax.random.normal(k_w, (out_features, in_features), dtype=jnp.float32) * 0.1
    bias = jax.random.normal(k_b, (out_features,), dtype=jnp.float32) * 0.1

    layer = HalfPrecisionLinear(weight, bias)
    out = jax.block_until_ready(layer(x))
    ref = reference(x, weight, bias)
    assert out.dtype == jnp.float32
    assert out.shape == (batch, seq, out_features)
    assert jnp.allclose(out, ref, atol=1e-2, rtol=1e-2)

    # --- Test 2: multi-K-tile accumulation + non-aligned / non-divisible dims. ---
    b2, s2, in2, out2 = 2, 130, 1200, 300          # M=260, K=1200, N=300
    x2 = jax.random.normal(k_x2, (b2, s2, in2), dtype=jnp.float32)
    w2 = jax.random.normal(k_w2, (out2, in2), dtype=jnp.float32) * 0.05
    bz2 = jax.random.normal(k_b2, (out2,), dtype=jnp.float32) * 0.1

    layer2 = HalfPrecisionLinear(w2, bz2, tk=1024)  # -> tk=640, 2 K-tiles
    out2_val = jax.block_until_ready(layer2(x2))
    ref2 = reference(x2, w2, bz2)
    assert out2_val.dtype == jnp.float32
    assert out2_val.shape == (b2, s2, out2)
    assert jnp.allclose(out2_val, ref2, atol=2e-2, rtol=2e-2)

    print("KERNEL_OK")
</pallas_src>

<mosaic_0001>
module attributes {stable_mosaic.version = 11 : i64} {
  func.func @_half_linear_kernel(%arg0: i32, %arg1: i32, %arg2: i32, %arg3: memref<8x128xbf16, #tpu.memory_space<vmem>>, %arg4: memref<128x128xbf16, #tpu.memory_space<vmem>>, %arg5: memref<1x128xbf16, #tpu.memory_space<vmem>>, %arg6: memref<8x128xf32, #tpu.memory_space<vmem>>) attributes {dimension_semantics = [#tpu.dimension_semantics<parallel>, #tpu.dimension_semantics<parallel>, #tpu.dimension_semantics<arbitrary>], iteration_bounds = array<i64: 2, 1, 1>, scalar_prefetch = 0 : i64, scratch_operands = 0 : i64, tpu.core_type = #tpu.core_type<tc>, window_params = [{transform_indices = @transform_0, window_bounds = array<i64: 8, 128>}, {transform_indices = @transform_1, window_bounds = array<i64: 128, 128>}, {transform_indices = @transform_2, window_bounds = array<i64: 1, 128>}, {transform_indices = @transform_3, window_bounds = array<i64: 8, 128>}]} {
    %c0_i32 = arith.constant 0 : i32
    %0 = arith.cmpi eq, %arg2, %c0_i32 : i32
    %1 = arith.extui %0 : i1 to i32
    %c0_i32_0 = arith.constant 0 : i32
    %2 = arith.cmpi ne, %1, %c0_i32_0 : i32
    scf.if %2 {
      %cst_10 = arith.constant 0.000000e+00 : f32
      %12 = vector.broadcast %cst_10 : f32 to vector<8x128xf32>
      %c0_11 = arith.constant 0 : index
      %c0_12 = arith.constant 0 : index
      %13 = vector.load %arg6[%c0_11, %c0_12] : memref<8x128xf32, #tpu.memory_space<vmem>>, vector<8x128xf32>
      tpu.vector_store %arg6[%c0_11, %c0_12], %12 {strides = array<i32>} : memref<8x128xf32, #tpu.memory_space<vmem>>, vector<8x128xf32>,
    } else {
    }
    %c0 = arith.constant 0 : index
    %c0_1 = arith.constant 0 : index
    %3 = vector.load %arg6[%c0, %c0_1] : memref<8x128xf32, #tpu.memory_space<vmem>>, vector<8x128xf32>
    %c0_2 = arith.constant 0 : index
    %c0_3 = arith.constant 0 : index
    %4 = vector.load %arg3[%c0_2, %c0_3] : memref<8x128xbf16, #tpu.memory_space<vmem>>, vector<8x128xbf16>
    %c0_4 = arith.constant 0 : index
    %c0_5 = arith.constant 0 : index
    %5 = vector.load %arg4[%c0_4, %c0_5] : memref<128x128xbf16, #tpu.memory_space<vmem>>, vector<128x128xbf16>
    %cst = arith.constant dense<0.000000e+00> : vector<8x128xf32>
    %6 = tpu.matmul %4, %5, %cst {dimension_numbers = #tpu.dot_dimension_numbers<[1], [0], [0], [1], [0, 0, 1, 1], [], []>} : vector<8x128xbf16>, vector<128x128xbf16>, vector<8x128xf32> -> vector<8x128xf32>
    %7 = arith.addf %3, %6 : vector<8x128xf32>
    %c0_6 = arith.constant 0 : index
    %c0_7 = arith.constant 0 : index
    %8 = vector.load %arg6[%c0_6, %c0_7] : memref<8x128xf32, #tpu.memory_space<vmem>>, vector<8x128xf32>
    tpu.vector_store %arg6[%c0_6, %c0_7], %7 {strides = array<i32>} : memref<8x128xf32, #tpu.memory_space<vmem>>, vector<8x128xf32>,
    %c0_i32_8 = arith.constant 0 : i32
    %9 = arith.cmpi eq, %arg2, %c0_i32_8 : i32
    %10 = arith.extui %9 : i1 to i32
    %c0_i32_9 = arith.constant 0 : i32
    %11 = arith.cmpi ne, %10, %c0_i32_9 : i32
    scf.if %11 {
      %c0_10 = arith.constant 0 : index
      %c0_11 = arith.constant 0 : index
      %12 = vector.load %arg6[%c0_10, %c0_11] : memref<8x128xf32, #tpu.memory_space<vmem>>, vector<8x128xf32>
      %c0_12 = arith.constant 0 : index
      %c0_13 = arith.constant 0 : index
      %13 = vector.load %arg5[%c0_12, %c0_13] : memref<1x128xbf16, #tpu.memory_space<vmem>>, vector<1x128xbf16>
      %14 = arith.extf %13 : vector<1x128xbf16> to vector<1x128xf32>
      %15 = vector.broadcast %14 : vector<1x128xf32> to vector<8x128xf32>
      %16 = arith.addf %12, %15 : vector<8x128xf32>
      %17 = arith.truncf %16 : vector<8x128xf32> to vector<8x128xbf16>
      %18 = arith.extf %17 : vector<8x128xbf16> to vector<8x128xf32>
      %c0_14 = arith.constant 0 : index
      %c0_15 = arith.constant 0 : index
      %19 = vector.load %arg6[%c0_14, %c0_15] : memref<8x128xf32, #tpu.memory_space<vmem>>, vector<8x128xf32>
      tpu.vector_store %arg6[%c0_14, %c0_15], %18 {strides = array<i32>} : memref<8x128xf32, #tpu.memory_space<vmem>>, vector<8x128xf32>,
    } else {
    }
    return
  }
  func.func @transform_0(%arg0: i32, %arg1: i32, %arg2: i32) -> (i32, i32) {
    %c0_i32 = arith.constant 0 : i32
    return %arg0, %arg2 : i32, i32
  }
  func.func @transform_1(%arg0: i32, %arg1: i32, %arg2: i32) -> (i32, i32) {
    %c0_i32 = arith.constant 0 : i32
    return %arg2, %arg1 : i32, i32
  }
  func.func @transform_2(%arg0: i32, %arg1: i32, %arg2: i32) -> (i32, i32) {
    %c0_i32 = arith.constant 0 : i32
    %c0_i32_0 = arith.constant 0 : i32
    return %c0_i32, %arg1 : i32, i32
  }
  func.func @transform_3(%arg0: i32, %arg1: i32, %arg2: i32) -> (i32, i32) {
    %c0_i32 = arith.constant 0 : i32
    return %arg0, %arg1 : i32, i32
  }
}

</mosaic_0001>

<bundles_post_ra>
// kernel: tpu_custom_call.1
= control target key start
LH: loop header
LB: loop body
LE: loop exit
PB: predicated region body
PF: predicated region fallthrough
CT: control target
= control target key end

     0   :  { %8 = vsyncpa [#allocation3], 0  ;;  %s928_s0 = inlined_call_operand.hbm [shape: bf16[16,128], index: 0, kind: input, shape index: {}]   ;;  %s929_s1 = inlined_call_operand.hbm [shape: bf16[128,128], index: 1, kind: input, shape index: {}]   ;;  %s930_s2 = inlined_call_operand.vmem [shape: bf16[1,128], index: 2, kind: input, shape index: {}]   ;;  %s931_s3 = inlined_call_operand.hbm [shape: f32[16,128], index: 3, kind: output, shape index: {}]  }
   0x1   :  { %10 = vsyncpa [#allocation3 + $0x1], 0 }
   0x2   :  { %11 = vsyncpa [#allocation6], 0 }
   0x3   :  { %12 = vsyncpa [#allocation4], 0 }
   0x4   :  { %14 = vsyncpa [#allocation4 + $0x1], 0  ;;  %s781_s12 = smov 0   ;;  %s783_s13 = smov 0  }
   0x5   :  { %s785_s14 = smov 0   ;;  %s787_s15 = smov 0  }
   0x6   :  { %s789_s16 = smov 0   ;;  %s791_s17 = smov 0  }
   0x7 LB: > { %s478_s18 = sadd.s32 4294967295, %s756_s17   ;;  %p480_p0 = scmp.ge.s32.totalorder %s756_s17, 1  ;;  %s756_s17 = sphi %s791_s17, %s20_s17   ;;  %s752_s16 = sphi %s789_s16, %s942_s16   ;;  %s748_s15 = sphi %s787_s15, %s941_s15   ;;  %s744_s14 = sphi %s785_s14, %s940_s14   ;;  %s740_s13 = sphi %s783_s13, %s939_s13   ;;  %s736_s12 = sphi %s781_s12, %s938_s12  }
   0x8   : > { %p813_p1 = scmp.eq.s32.totalorder %s478_s18, 0  ;;  %p154_p2 = scmp.lt.s32.totalorder %s756_s17, 3 }
   0x9   : > { %s169_s22 = sshll.u32 %s929_s1, 4  ;;  %s758_s24 = smov [#allocation5]   ;;  %s170_s22 = int_to_ptr.hbm [resolvable:$true] %s169_s22 }
   0xa   : > { %p821_p3 = pnand %p480_p0, %p154_p2  ;;  %s171_s25 = sshll.u32 %s758_s24, 4  ;;  %s172_s25 = int_to_ptr.vmem [resolvable:$true] %s171_s25 }
   0xb   : > { %p483_p6 = scmp.ge.s32.totalorder %s756_s17, 2  ;;  %s759_s26 = smov 64  }
   0xc   : > { %p542_p4 = pneg %p821_p3  ;;  %s760_s27 = smov 4  }
   0xd   : > { %s479_s28 = sadd.s32 4294967294, %s756_s17   ;;  %s39_s29 = sadd.s32 1, %s752_s16 }
   0xe   : > { %p543_p5 = pnand %p542_p4, %p813_p1  ;;  %s48_s30 = sadd.s32 1, %s744_s14 }
   0xf   : > { %p41_p7 = scmp.ge.s32.totalorder %s39_s29, 2  ;;  %p55_p8 = scmp.ne.s32.totalorder %s744_s14, %s740_s13 }
  0x10   : > { %545 = dma.hbm_to_vmem [thread:$0]  (!%p543_p5), %s170_s22, 1024, %s172_s25, [#allocation6], %s759_s26, %s759_s26, %s760_s27  }
  0x11   : > { %p56_p9 = scmp.eq.s32.totalorder %s756_s17, 0  ;;  %p61_p10 = scmp.ne.s32.totalorder %s740_s13, %s736_s12 }
  0x12   : > { %s944_s29 = smov (%p41_p7, %s39_s29), 0  ;;  %p141_p13 = scmp.eq.s32.totalorder %s478_s18, 1 }
  0x13   : > { %p840_p11 = por %p56_p9, %p55_p8  ;;  %p846_p12 = por %p813_p1, %p61_p10 }
  0x14   : > { %s43_s6 = ssub.s32 %s752_s16, %s944_s29  ;;  %p147_p2 = scmp.eq.s32.totalorder %s479_s28, 1 }
  0x15   : > { %p46_p0 = scmp.eq.s32.totalorder %s43_s6, 0  ;;  %p852_p4 = por %p141_p13, %p55_p8 }
  0x16   : > { %p555_p5 = scmp.lt.s32.totalorder %s756_s17, 2  ;;  %p860_p7 = por %p147_p2, %p61_p10 }
  0x17   : > { %s858_s8 = scalar_select %p46_p0, %s744_s14, %s48_s30  }
  0x18   : > { %s191_s10 = sand.u32 1, %s744_s14   ;;  %s485_s20 = sshll.u32 %s752_s16, 2 }
  0x19   : > { %s484_s11 = sshll.u32 %s191_s10, 2  ;;  %s200_s18 = scalar_lea.hbm %s928_s0, %s485_s20 }
  0x1a   : > { %s195_s24 = scalar_lea.vmem [#allocation2], %s484_s11  ;;  %s202_s26 = sshll.u32 %s200_s18, 4  ;;  %s203_s26 = int_to_ptr.hbm [resolvable:$true] %s202_s26 }
  0x1b   : > { %s204_s25 = sshll.u32 %s195_s24, 4  ;;  %p547_p8 = pnand %p555_p5, %p840_p11  ;;  %s205_s25 = int_to_ptr.vmem [resolvable:$true] %s204_s25 }
  0x1c   : > { %s192_s27 = scalar_lea.sflag [#allocation3], %s191_s10  ;;  %213 = sbr.rel (%p821_p3) target bundleno = 204 (0xcc), region = 32 }
  0x1d   : > { %549 = dma.hbm_to_vmem [thread:$0]  (!%p547_p8), %s203_s26, 64, %s205_s25, %s192_s27  }
  0x1e   : > { %s874_s28 = sand.u32 (!%p821_p3), 1, %s740_s13  }
  0x1f   : > { %s487_s30 = sshll.u32 (!%p821_p3), %s874_s28, 2  ;;  %s216_s6 = scalar_lea.sflag (!%p821_p3), [#allocation3], %s874_s28 }
  0x20   : > { %s219_s11 = scalar_lea.vmem (!%p821_p3), [#allocation2], %s487_s30 }
  0x21   : > { %723 = dma.done.wait (%p846_p12), %s216_s6, 64  }
  0x22   : > { %725 = vsyncadd (%p846_p12), %s216_s6, 4294967232 }
  0x23   : > { %727 = dma.done.wait (%p813_p1), [#allocation6], 1024  }
  0x24   : > { %729 = vsyncadd (%p813_p1), [#allocation6], 4294966272  ;;  %v533_v0 = vld [vmem:[#allocation5 + $0x38] sm:$0xff]  ;;  %v532_v1 = vld [vmem:[#allocation5 + $0x30] sm:$0xff]  ;;  %s489_s4 = sshll.u32 %s874_s28, 3  ;;  %s523_s5 = sshll.u32 %s748_s15, 3 }
  0x25   : > { %326 = vmatpush.bf16.msra.mxu0 %v533_v0  ;;  %v531_v2 = vld [vmem:[#allocation5 + $0x28] sm:$0xff]  ;;  %v530_v3 = vld [vmem:[#allocation5 + $0x20] sm:$0xff]  ;;  %v529_v4 = vld [vmem:[#allocation5 + $0x18] sm:$0xff]  ;;  %s364_s21 = scalar_lea.hbm %s931_s3, %s523_s5  ;;  %s250_s22 = scalar_lea.vmem [#allocation7], %s489_s4 }
  0x26   : > { %v528_v5 = vld [vmem:[#allocation5 + $0x10] sm:$0xff]  ;;  %v527_v6 = vld [vmem:[#allocation5 + $0x8] sm:$0xff]  ;;  %v526_v7 = vld [vmem:[#allocation5] sm:$0xff]  ;;  %s366_s18 = sshll.u32 %s250_s22, 4  ;;  %s368_s24 = sshll.u32 %s364_s21, 4  ;;  %s367_s18 = int_to_ptr.vmem [resolvable:$true] %s366_s18  ;;  %s369_s24 = int_to_ptr.hbm [resolvable:$true] %s368_s24 }
  0x27   : > { %v261_v8 = vld [vmem:[%s219_s11] sm:$0xf]  ;;  %s353_s25 = scalar_lea.sflag [#allocation4], %s874_s28  ;;  %s684_s26 = sshra.s32 %s369_s24, 4  ;;  %s685_s26 = int_to_ptr.hbm [resolvable:$true] %s684_s26 }
  0x28   : > { %v345_v9 = vld [vmem:[%s930_s2] sm:$0x1]  ;;  %s686_s15 = scalar_lea.hbm %s685_s26, 8  ;;  %s690_s6 = scalar_lea.hbm %s931_s3, 16 }
  0x29   : > { %327 = vmatpush.bf16.msra.mxu0 %v532_v1  ;;  %v346_v10 = vunpack.c.l.bf16 %v345_v9  ;;  %p687_p1 = scmp.ne.s32.totalorder %s685_s26, %s686_s15  ;;  %p691_p10 = scmp.lt.s32.totalorder %s685_s26, %s931_s3 }
  0x2a   : > { %p692_p11 = scmp.lt.s32.totalorder %s690_s6, %s686_s15 }
  0x2b   : > { %v347_v11 = vperm.slane %v346_v10, 0  ;;  %p688_p3 = pnand %p687_p1, %p852_p4 }
  0x2c   : > { %p693_p12 = por %p692_p11, %p691_p10 }
  0x2d   : > { %328 = vmatpush.bf16.msra.mxu0 %v531_v2  ;;  %p689_p9 = pneg %p688_p3 }
  0x2f   : > { %p694_p13 = pnand %p693_p12, %p689_p9 }
  0x31   : > { %329 = vmatpush.bf16.msra.mxu0 %v530_v3 }
  0x35   : > { %330 = vmatpush.bf16.msra.mxu0 %v529_v4 }
  0x39   : > { %331 = vmatpush.bf16.msra.mxu0 %v528_v5 }
  0x3d   : > { %332 = vmatpush.bf16.msra.mxu0 %v527_v6 }
  0x41   : > { %333 = vmatpush.bf16.msra.mxu0 %v526_v7 }
  0x44   : > { %334 = vmatmul.bf16.vlgmr.msra.gmra.mxu0 %v261_v8 }
  0xc1   : > { %v335_v12 = vpop.f32.mrf.mxu0 }
  0xc2   : > { %v348_v13 = vadd.f32 %v347_v11, %v335_v12 }
  0xc4   : > { %v349_v14 = vpack.c.bf16 %v348_v13, %v348_v13 }
  0xc6   : > { %v350_v15 = vunpack.c.l.bf16 %v349_v14 }
  0xc8   : > { %351 = vst [vmem:[%s250_s22] sm:$0xff] %v350_v15 }
  0xc9   : > { %v337_v16 = vpop.f32.mrf.mxu0 }
  0xca   : > { %697 = shalt.err (!%p694_p13)
}
  0xcb   : > { %540 = dma.vmem_to_hbm [thread:$0]  (%p852_p4), %s367_s18, 128, %s369_s24, %s353_s25  }
  0xcc PF: > { %s380_s28 = sand.u32 1, %s736_s12   ;;  %p551_p0 = pnand %p483_p6, %p860_p7 }
  0xcd   : > { %s381_s23 = scalar_lea.sflag [#allocation4], %s380_s28 }
  0xce   : > { %p552_p2 = pneg %p551_p0 }
  0xd0   : > { %731 = dma.done.wait (%p552_p2), %s381_s23, 128  }
  0xd1   : > { %733 = vsyncadd (%p552_p2), %s381_s23, 4294967168  ;;  %s20_s17 = sadd.s32 1, %s756_s17   ;;  %s938_s12 = smov %s740_s13 }
  0xd2   : > { %p17_p5 = scmp.ge.s32.totalorder %s20_s17, 4   ;;  %s939_s13 = smov %s744_s14 }
  0xd3   : > { %s940_s14 = smov %s858_s8  ;;  %s941_s15 = smov %s752_s16 }
  0xd4   : > { %s942_s16 = smov %s944_s29  ;;  %19 = sbr.rel (!%p17_p5) target bundleno = 7 (0x7), region = 93 }
  0xd9   :  { %387 = vsyncpa [#allocation3], 1 }
  0xda   :  { %389 = vsyncpa [#allocation3 + $0x1], 1 }
  0xdb   :  { %390 = vsyncpa [#allocation6], 1 }
  0xdc   :  { %391 = vsyncpa [#allocation4], 1 }
  0xdd   :  { %393 = vsyncpa [#allocation4 + $0x1], 1 }

</bundles_post_ra>
